<compile_context>
chip_gen: v5e
topology: v5e:2x2
jax: 0.10.0
libtpu: 0.0.40
codegen_flags: <defaults>
</compile_context>

<pallas_src>
import functools

import jax
import jax.numpy as jnp
from jax.experimental import pallas as pl
from jax.experimental.pallas import tpu as pltpu

LANE = 128                # lane width / minimum batch tile
D_IN = 12                 # true input feature count
D_IN_PAD = 16             # input features padded to a sublane-aligned K
H_PAD = 32                # hidden feature padding (covers both 28 and 17)
N_HIDDEN = 8              # hidden layers 1..8
# True (unpadded) layer widths, matching the PyTorch module defaults.
LAYER_DIMS = [12, 28, 17, 17, 17, 17, 17, 17, 17, 17, 1]


def _round_up(n, m):
    return -(-n // m) * m


def _mlp_kernel(x_ref, w0_ref, b0_ref, wm_ref, bm_ref, wo_ref, bo_ref, o_ref):
    """One batch tile; the batch rides the 128-lane axis.

    x_ref : (D_IN_PAD, TM) f32         (feature rows 12..15 are zero)
    w0_ref: (H_PAD, D_IN_PAD) cdt      b0_ref: (H_PAD, 1) f32
    wm_ref: (N_HIDDEN, H_PAD, H_PAD)   bm_ref: (N_HIDDEN, H_PAD, 1) f32
    wo_ref: (8, H_PAD) cdt (row 0 real, rows 1..7 zero)
    bo_ref: (1, 1) f32 in SMEM
    o_ref : (1, TM) f32
    """
    cdt = w0_ref.dtype  # MXU compute dtype (bf16 or f32); accumulation is f32

    # Layer 0: Linear(12 -> 28) + ReLU.  Padded rows stay exactly 0 because
    # padded weight rows / biases are 0 and relu(0) == 0.
    h = jnp.dot(w0_ref[...], x_ref[...].astype(cdt),
                preferred_element_type=jnp.float32) + b0_ref[...]
    h = jnp.maximum(h, 0.0)

    # 8 hidden Linear + ReLU layers, fully unrolled with static weight slices.
    for i in range(N_HIDDEN):
        z = jnp.dot(wm_ref[i], h.astype(cdt),
                    preferred_element_type=jnp.float32) + bm_ref[i]
        h = jnp.maximum(z, 0.0)

    # Output layer: Linear(17 -> 1) + sigmoid.  Only row 0 of wo is real, so
    # keep just that row of the product -> a lane-dense (1, TM) store.
    z = jnp.dot(wo_ref[...], h.astype(cdt), preferred_element_type=jnp.float32)
    o_ref[...] = jax.nn.sigmoid(z[0:1, :] + bo_ref[0, 0])


def pack_params(weights, biases, dtype=jnp.bfloat16):
    """Pack PyTorch-convention params (W: (out, in), b: (out,)) ONCE into the
    transposed, padded layout the kernel expects.  Call at setup time only.
    bf16 weights are the default (MXU fast path); biases stay f32."""
    w0 = jnp.zeros((H_PAD, D_IN_PAD), dtype)
    w0 = w0.at[:LAYER_DIMS[1], :D_IN].set(jnp.asarray(weights[0]).astype(dtype))
    b0 = jnp.zeros((H_PAD, 1), jnp.float32)
    b0 = b0.at[:LAYER_DIMS[1], 0].set(jnp.asarray(biases[0], jnp.float32))

    wm = jnp.zeros((N_HIDDEN, H_PAD, H_PAD), dtype)
    bm = jnp.zeros((N_HIDDEN, H_PAD, 1), jnp.float32)
    for i in range(N_HIDDEN):
        din, dout = LAYER_DIMS[i + 1], LAYER_DIMS[i + 2]
        wm = wm.at[i, :dout, :din].set(jnp.asarray(weights[i + 1]).astype(dtype))
        bm = bm.at[i, :dout, 0].set(jnp.asarray(biases[i + 1], jnp.float32))

    wo = jnp.zeros((8, H_PAD), dtype)
    wo = wo.at[0, :LAYER_DIMS[-2]].set(
        jnp.asarray(weights[-1]).reshape(-1).astype(dtype))
    bo = jnp.asarray(biases[-1], jnp.float32).reshape(1, 1)

    return dict(w0=w0, b0=b0, wm=wm, bm=bm, wo=wo, bo=bo)


@functools.partial(jax.jit, static_argnames=("tm", "m_pad"))
def _forward_impl(x, params, *, tm, m_pad):
    batch = x.shape[0]
    # Pad features 12 -> 16, batch -> m_pad, transposed to batch-on-lanes.
    x_t = jnp.zeros((D_IN_PAD, m_pad), jnp.float32)
    x_t = x_t.at[:D_IN, :batch].set(jnp.asarray(x, jnp.float32).T)

    out = pl.pallas_call(
        _mlp_kernel,
        out_shape=jax.ShapeDtypeStruct((1, m_pad), jnp.float32),
        grid_spec=pltpu.PrefetchScalarGridSpec(
            num_scalar_prefetch=0,
            grid=(m_pad // tm,),
            in_specs=[
                # Batch-tiled activations (lane-dense along the batch).
                pl.BlockSpec((D_IN_PAD, tm), lambda i: (0, i)),
                # Weights / biases stay resident in VMEM across batch tiles.
                pl.BlockSpec((H_PAD, D_IN_PAD), lambda i: (0, 0)),
                pl.BlockSpec((H_PAD, 1), lambda i: (0, 0)),
                pl.BlockSpec((N_HIDDEN, H_PAD, H_PAD), lambda i: (0, 0, 0)),
                pl.BlockSpec((N_HIDDEN, H_PAD, 1), lambda i: (0, 0, 0)),
                pl.BlockSpec((8, H_PAD), lambda i: (0, 0)),
                # Scalar output bias in SMEM.
                pl.BlockSpec(memory_space=pltpu.MemorySpace.SMEM),
            ],
            out_specs=pl.BlockSpec((1, tm), lambda i: (0, i)),
        ),
        compiler_params=pltpu.CompilerParams(
            dimension_semantics=("parallel",)),  # megacore shard on v7x
    )(x_t, params["w0"], params["b0"], params["wm"], params["bm"],
      params["wo"], params["bo"])
    return out[0, :batch].reshape(batch, 1)


def net_forward_pallas(x, params, *, tm=1024):
    """x: (batch, 12) float. params: output of pack_params. Returns (batch, 1)."""
    batch = x.shape[0]
    if batch > LANE:
        # Cap the tile so the parallel grid has >= 2 steps (keeps both v7x
        # TensorCores busy for mid-size batches) but never below 128 lanes.
        tm_eff = min(tm, max(LANE, _round_up(-(-batch // 2), LANE)))
    else:
        tm_eff = LANE
    m_pad = _round_up(batch, tm_eff)
    return _forward_impl(x, params, tm=tm_eff, m_pad=m_pad)


def _init_params(key):
    """Deterministic PyTorch-style init: U(-1/sqrt(fan_in), 1/sqrt(fan_in))."""
    weights, biases = [], []
    for i in range(len(LAYER_DIMS) - 1):
        din, dout = LAYER_DIMS[i], LAYER_DIMS[i + 1]
        key, kw, kb = jax.random.split(key, 3)
        bound = 1.0 / jnp.sqrt(jnp.float32(din))
        weights.append(jax.random.uniform(kw, (dout, din), jnp.float32, -bound, bound))
        biases.append(jax.random.uniform(kb, (dout,), jnp.float32, -bound, bound))
    return weights, biases


def _reference_forward(x, weights, biases):
    h = x.astype(jnp.float32)
    for i in range(len(weights) - 1):
        h = jnp.maximum(h @ weights[i].T + biases[i], 0.0)
    return jax.nn.sigmoid(h @ weights[-1].T + biases[-1])


if __name__ == "__main__":
    key = jax.random.PRNGKey(0)
    key, kx1, kx2 = jax.random.split(key, 3)
    weights, biases = _init_params(key)

    # Full-precision path (tight check against the reference).
    params_f32 = pack_params(weights, biases, dtype=jnp.float32)

    # Small batch: single 128-lane tile.
    x_small = jax.random.normal(kx1, (8, D_IN), jnp.float32)
    out_small = jax.block_until_ready(net_forward_pallas(x_small, params_f32))
    ref_small = _reference_forward(x_small, weights, biases)
    assert out_small.shape == (8, 1)
    assert jnp.allclose(out_small, ref_small, atol=1e-4, rtol=1e-4)

    # Non-tile-aligned batch: exercises the 2-step "parallel" grid and the
    # batch-padding path (batch=300 -> tm=256, m_pad=512, grid=(2,)).
    x_big = jax.random.normal(kx2, (300, D_IN), jnp.float32)
    out_big = jax.block_until_ready(net_forward_pallas(x_big, params_f32))
    ref_big = _reference_forward(x_big, weights, biases)
    assert out_big.shape == (300, 1)
    assert jnp.allclose(out_big, ref_big, atol=1e-4, rtol=1e-4)

    # Default bf16 weights (MXU fast path, esp. v5e/v6e); f32 accumulation.
    params_bf16 = pack_params(weights, biases)
    out_bf16 = jax.block_until_ready(net_forward_pallas(x_big, params_bf16))
    assert out_bf16.shape == (300, 1)
    assert jnp.allclose(out_bf16, ref_big, atol=3e-2)

    print("KERNEL_OK")
</pallas_src>

<mosaic_0001>
module attributes {stable_mosaic.version = 11 : i64} {
  func.func @_mlp_kernel(%arg0: i32, %arg1: memref<16x128xf32, #tpu.memory_space<vmem>>, %arg2: memref<32x16xf32, #tpu.memory_space<vmem>>, %arg3: memref<32x1xf32, #tpu.memory_space<vmem>>, %arg4: memref<8x32x32xf32, #tpu.memory_space<vmem>>, %arg5: memref<8x32x1xf32, #tpu.memory_space<vmem>>, %arg6: memref<8x32xf32, #tpu.memory_space<vmem>>, %arg7: memref<1x1xf32, #tpu.memory_space<smem>>, %arg8: memref<1x128xf32, #tpu.memory_space<vmem>>) attributes {dimension_semantics = [#tpu.dimension_semantics<parallel>], iteration_bounds = array<i64: 1>, scalar_prefetch = 0 : i64, scratch_operands = 0 : i64, tpu.core_type = #tpu.core_type<tc>, window_params = [{transform_indices = @transform_0, window_bounds = array<i64: 16, 128>}, {pipeline_mode = #tpu.pipeline_mode<synchronous>, transform_indices = @transform_1, window_bounds = array<i64: 32, 16>}, {pipeline_mode = #tpu.pipeline_mode<synchronous>, transform_indices = @transform_2, window_bounds = array<i64: 32, 1>}, {pipeline_mode = #tpu.pipeline_mode<synchronous>, transform_indices = @transform_3, window_bounds = array<i64: 8, 32, 32>}, {pipeline_mode = #tpu.pipeline_mode<synchronous>, transform_indices = @transform_4, window_bounds = array<i64: 8, 32, 1>}, {pipeline_mode = #tpu.pipeline_mode<synchronous>, transform_indices = @transform_5, window_bounds = array<i64: 8, 32>}, {transform_indices = @transform_6, window_bounds = array<i64: 1, 1>}, {transform_indices = @transform_7, window_bounds = array<i64: 1, 128>}]} {
    %c0 = arith.constant 0 : index
    %c0_0 = arith.constant 0 : index
    %0 = vector.load %arg2[%c0, %c0_0] : memref<32x16xf32, #tpu.memory_space<vmem>>, vector<32x16xf32>
    %c0_1 = arith.constant 0 : index
    %c0_2 = arith.constant 0 : index
    %1 = vector.load %arg1[%c0_1, %c0_2] : memref<16x128xf32, #tpu.memory_space<vmem>>, vector<16x128xf32>
    %cst = arith.constant dense<0.000000e+00> : vector<32x128xf32>
    %2 = tpu.matmul %0, %1, %cst {dimension_numbers = #tpu.dot_dimension_numbers<[1], [0], [0], [1], [0, 0, 1, 1], [], []>} : vector<32x16xf32>, vector<16x128xf32>, vector<32x128xf32> -> vector<32x128xf32>
    %c0_3 = arith.constant 0 : index
    %c0_4 = arith.constant 0 : index
    %3 = vector.load %arg3[%c0_3, %c0_4] : memref<32x1xf32, #tpu.memory_space<vmem>>, vector<32x1xf32>
    %4 = vector.broadcast %3 : vector<32x1xf32> to vector<32x128xf32>
    %5 = arith.addf %2, %4 : vector<32x128xf32>
    %cst_5 = arith.constant 0.000000e+00 : f32
    %6 = vector.broadcast %cst_5 : f32 to vector<32x128xf32>
    %7 = arith.maximumf %5, %6 : vector<32x128xf32>
    %c0_6 = arith.constant 0 : index
    %c0_7 = arith.constant 0 : index
    %c0_8 = arith.constant 0 : index
    %8 = vector.load %arg4[%c0_6, %c0_7, %c0_8] : memref<8x32x32xf32, #tpu.memory_space<vmem>>, vector<1x32x32xf32>
    %9 = vector.shape_cast %8 : vector<1x32x32xf32> to vector<32x32xf32>
    %cst_9 = arith.constant dense<0.000000e+00> : vector<32x128xf32>
    %10 = tpu.matmul %9, %7, %cst_9 {dimension_numbers = #tpu.dot_dimension_numbers<[1], [0], [0], [1], [0, 0, 1, 1], [], []>} : vector<32x32xf32>, vector<32x128xf32>, vector<32x128xf32> -> vector<32x128xf32>
    %c0_10 = arith.constant 0 : index
    %c0_11 = arith.constant 0 : index
    %c0_12 = arith.constant 0 : index
    %11 = vector.load %arg5[%c0_10, %c0_11, %c0_12] : memref<8x32x1xf32, #tpu.memory_space<vmem>>, vector<1x32x1xf32>
    %12 = vector.shape_cast %11 : vector<1x32x1xf32> to vector<32x1xf32>
    %13 = vector.broadcast %12 : vector<32x1xf32> to vector<32x128xf32>
    %14 = arith.addf %10, %13 : vector<32x128xf32>
    %cst_13 = arith.constant 0.000000e+00 : f32
    %15 = vector.broadcast %cst_13 : f32 to vector<32x128xf32>
    %16 = arith.maximumf %14, %15 : vector<32x128xf32>
    %c1 = arith.constant 1 : index
    %c0_14 = arith.constant 0 : index
    %c0_15 = arith.constant 0 : index
    %17 = vector.load %arg4[%c1, %c0_14, %c0_15] : memref<8x32x32xf32, #tpu.memory_space<vmem>>, vector<1x32x32xf32>
    %18 = vector.shape_cast %17 : vector<1x32x32xf32> to vector<32x32xf32>
    %cst_16 = arith.constant dense<0.000000e+00> : vector<32x128xf32>
    %19 = tpu.matmul %18, %16, %cst_16 {dimension_numbers = #tpu.dot_dimension_numbers<[1], [0], [0], [1], [0, 0, 1, 1], [], []>} : vector<32x32xf32>, vector<32x128xf32>, vector<32x128xf32> -> vector<32x128xf32>
    %c1_17 = arith.constant 1 : index
    %c0_18 = arith.constant 0 : index
    %c0_19 = arith.constant 0 : index
    %20 = vector.load %arg5[%c1_17, %c0_18, %c0_19] : memref<8x32x1xf32, #tpu.memory_space<vmem>>, vector<1x32x1xf32>
    %21 = vector.shape_cast %20 : vector<1x32x1xf32> to vector<32x1xf32>
    %22 = vector.broadcast %21 : vector<32x1xf32> to vector<32x128xf32>
    %23 = arith.addf %19, %22 : vector<32x128xf32>
    %cst_20 = arith.constant 0.000000e+00 : f32
    %24 = vector.broadcast %cst_20 : f32 to vector<32x128xf32>
    %25 = arith.maximumf %23, %24 : vector<32x128xf32>
    %c2 = arith.constant 2 : index
    %c0_21 = arith.constant 0 : index
    %c0_22 = arith.constant 0 : index
    %26 = vector.load %arg4[%c2, %c0_21, %c0_22] : memref<8x32x32xf32, #tpu.memory_space<vmem>>, vector<1x32x32xf32>
    %27 = vector.shape_cast %26 : vector<1x32x32xf32> to vector<32x32xf32>
    %cst_23 = arith.constant dense<0.000000e+00> : vector<32x128xf32>
    %28 = tpu.matmul %27, %25, %cst_23 {dimension_numbers = #tpu.dot_dimension_numbers<[1], [0], [0], [1], [0, 0, 1, 1], [], []>} : vector<32x32xf32>, vector<32x128xf32>, vector<32x128xf32> -> vector<32x128xf32>
    %c2_24 = arith.constant 2 : index
    %c0_25 = arith.constant 0 : index
    %c0_26 = arith.constant 0 : index
    %29 = vector.load %arg5[%c2_24, %c0_25, %c0_26] : memref<8x32x1xf32, #tpu.memory_space<vmem>>, vector<1x32x1xf32>
    %30 = vector.shape_cast %29 : vector<1x32x1xf32> to vector<32x1xf32>
    %31 = vector.broadcast %30 : vector<32x1xf32> to vector<32x128xf32>
    %32 = arith.addf %28, %31 : vector<32x128xf32>
    %cst_27 = arith.constant 0.000000e+00 : f32
    %33 = vector.broadcast %cst_27 : f32 to vector<32x128xf32>
    %34 = arith.maximumf %32, %33 : vector<32x128xf32>
    %c3 = arith.constant 3 : index
    %c0_28 = arith.constant 0 : index
    %c0_29 = arith.constant 0 : index
    %35 = vector.load %arg4[%c3, %c0_28, %c0_29] : memref<8x32x32xf32, #tpu.memory_space<vmem>>, vector<1x32x32xf32>
    %36 = vector.shape_cast %35 : vector<1x32x32xf32> to vector<32x32xf32>
    %cst_30 = arith.constant dense<0.000000e+00> : vector<32x128xf32>
    %37 = tpu.matmul %36, %34, %cst_30 {dimension_numbers = #tpu.dot_dimension_numbers<[1], [0], [0], [1], [0, 0, 1, 1], [], []>} : vector<32x32xf32>, vector<32x128xf32>, vector<32x128xf32> -> vector<32x128xf32>
    %c3_31 = arith.constant 3 : index
    %c0_32 = arith.constant 0 : index
    %c0_33 = arith.constant 0 : index
    %38 = vector.load %arg5[%c3_31, %c0_32, %c0_33] : memref<8x32x1xf32, #tpu.memory_space<vmem>>, vector<1x32x1xf32>
    %39 = vector.shape_cast %38 : vector<1x32x1xf32> to vector<32x1xf32>
    %40 = vector.broadcast %39 : vector<32x1xf32> to vector<32x128xf32>
    %41 = arith.addf %37, %40 : vector<32x128xf32>
    %cst_34 = arith.constant 0.000000e+00 : f32
    %42 = vector.broadcast %cst_34 : f32 to vector<32x128xf32>
    %43 = arith.maximumf %41, %42 : vector<32x128xf32>
    %c4 = arith.constant 4 : index
    %c0_35 = arith.constant 0 : index
    %c0_36 = arith.constant 0 : index
    %44 = vector.load %arg4[%c4, %c0_35, %c0_36] : memref<8x32x32xf32, #tpu.memory_space<vmem>>, vector<1x32x32xf32>
    %45 = vector.shape_cast %44 : vector<1x32x32xf32> to vector<32x32xf32>
    %cst_37 = arith.constant dense<0.000000e+00> : vector<32x128xf32>
    %46 = tpu.matmul %45, %43, %cst_37 {dimension_numbers = #tpu.dot_dimension_numbers<[1], [0], [0], [1], [0, 0, 1, 1], [], []>} : vector<32x32xf32>, vector<32x128xf32>, vector<32x128xf32> -> vector<32x128xf32>
    %c4_38 = arith.constant 4 : index
    %c0_39 = arith.constant 0 : index
    %c0_40 = arith.constant 0 : index
    %47 = vector.load %arg5[%c4_38, %c0_39, %c0_40] : memref<8x32x1xf32, #tpu.memory_space<vmem>>, vector<1x32x1xf32>
    %48 = vector.shape_cast %47 : vector<1x32x1xf32> to vector<32x1xf32>
    %49 = vector.broadcast %48 : vector<32x1xf32> to vector<32x128xf32>
    %50 = arith.addf %46, %49 : vector<32x128xf32>
    %cst_41 = arith.constant 0.000000e+00 : f32
    %51 = vector.broadcast %cst_41 : f32 to vector<32x128xf32>
    %52 = arith.maximumf %50, %51 : vector<32x128xf32>
    %c5 = arith.constant 5 : index
    %c0_42 = arith.constant 0 : index
    %c0_43 = arith.constant 0 : index
    %53 = vector.load %arg4[%c5, %c0_42, %c0_43] : memref<8x32x32xf32, #tpu.memory_space<vmem>>, vector<1x32x32xf32>
    %54 = vector.shape_cast %53 : vector<1x32x32xf32> to vector<32x32xf32>
    %cst_44 = arith.constant dense<0.000000e+00> : vector<32x128xf32>
    %55 = tpu.matmul %54, %52, %cst_44 {dimension_numbers = #tpu.dot_dimension_numbers<[1], [0], [0], [1], [0, 0, 1, 1], [], []>} : vector<32x32xf32>, vector<32x128xf32>, vector<32x128xf32> -> vector<32x128xf32>
    %c5_45 = arith.constant 5 : index
    %c0_46 = arith.constant 0 : index
    %c0_47 = arith.constant 0 : index
    %56 = vector.load %arg5[%c5_45, %c0_46, %c0_47] : memref<8x32x1xf32, #tpu.memory_space<vmem>>, vector<1x32x1xf32>
    %57 = vector.shape_cast %56 : vector<1x32x1xf32> to vector<32x1xf32>
    %58 = vector.broadcast %57 : vector<32x1xf32> to vector<32x128xf32>
    %59 = arith.addf %55, %58 : vector<32x128xf32>
    %cst_48 = arith.constant 0.000000e+00 : f32
    %60 = vector.broadcast %cst_48 : f32 to vector<32x128xf32>
    %61 = arith.maximumf %59, %60 : vector<32x128xf32>
    %c6 = arith.constant 6 : index
    %c0_49 = arith.constant 0 : index
    %c0_50 = arith.constant 0 : index
    %62 = vector.load %arg4[%c6, %c0_49, %c0_50] : memref<8x32x32xf32, #tpu.memory_space<vmem>>, vector<1x32x32xf32>
    %63 = vector.shape_cast %62 : vector<1x32x32xf32> to vector<32x32xf32>
    %cst_51 = arith.constant dense<0.000000e+00> : vector<32x128xf32>
    %64 = tpu.matmul %63, %61, %cst_51 {dimension_numbers = #tpu.dot_dimension_numbers<[1], [0], [0], [1], [0, 0, 1, 1], [], []>} : vector<32x32xf32>, vector<32x128xf32>, vector<32x128xf32> -> vector<32x128xf32>
    %c6_52 = arith.constant 6 : index
    %c0_53 = arith.constant 0 : index
    %c0_54 = arith.constant 0 : index
    %65 = vector.load %arg5[%c6_52, %c0_53, %c0_54] : memref<8x32x1xf32, #tpu.memory_space<vmem>>, vector<1x32x1xf32>
    %66 = vector.shape_cast %65 : vector<1x32x1xf32> to vector<32x1xf32>
    %67 = vector.broadcast %66 : vector<32x1xf32> to vector<32x128xf32>
    %68 = arith.addf %64, %67 : vector<32x128xf32>
    %cst_55 = arith.constant 0.000000e+00 : f32
    %69 = vector.broadcast %cst_55 : f32 to vector<32x128xf32>
    %70 = arith.maximumf %68, %69 : vector<32x128xf32>
    %c7 = arith.constant 7 : index
    %c0_56 = arith.constant 0 : index
    %c0_57 = arith.constant 0 : index
    %71 = vector.load %arg4[%c7, %c0_56, %c0_57] : memref<8x32x32xf32, #tpu.memory_space<vmem>>, vector<1x32x32xf32>
    %72 = vector.shape_cast %71 : vector<1x32x32xf32> to vector<32x32xf32>
    %cst_58 = arith.constant dense<0.000000e+00> : vector<32x128xf32>
    %73 = tpu.matmul %72, %70, %cst_58 {dimension_numbers = #tpu.dot_dimension_numbers<[1], [0], [0], [1], [0, 0, 1, 1], [], []>} : vector<32x32xf32>, vector<32x128xf32>, vector<32x128xf32> -> vector<32x128xf32>
    %c7_59 = arith.constant 7 : index
    %c0_60 = arith.constant 0 : index
    %c0_61 = arith.constant 0 : index
    %74 = vector.load %arg5[%c7_59, %c0_60, %c0_61] : memref<8x32x1xf32, #tpu.memory_space<vmem>>, vector<1x32x1xf32>
    %75 = vector.shape_cast %74 : vector<1x32x1xf32> to vector<32x1xf32>
    %76 = vector.broadcast %75 : vector<32x1xf32> to vector<32x128xf32>
    %77 = arith.addf %73, %76 : vector<32x128xf32>
    %cst_62 = arith.constant 0.000000e+00 : f32
    %78 = vector.broadcast %cst_62 : f32 to vector<32x128xf32>
    %79 = arith.maximumf %77, %78 : vector<32x128xf32>
    %c0_63 = arith.constant 0 : index
    %c0_64 = arith.constant 0 : index
    %80 = vector.load %arg6[%c0_63, %c0_64] : memref<8x32xf32, #tpu.memory_space<vmem>>, vector<8x32xf32>
    %cst_65 = arith.constant dense<0.000000e+00> : vector<8x128xf32>
    %81 = tpu.matmul %80, %79, %cst_65 {dimension_numbers = #tpu.dot_dimension_numbers<[1], [0], [0], [1], [0, 0, 1, 1], [], []>} : vector<8x32xf32>, vector<32x128xf32>, vector<8x128xf32> -> vector<8x128xf32>
    %82 = vector.extract_strided_slice %81 {offsets = [0, 0], sizes = [1, 128], strides = [1, 1]} : vector<8x128xf32> to vector<1x128xf32>
    %c0_66 = arith.constant 0 : index
    %c0_67 = arith.constant 0 : index
    %83 = memref.load %arg7[%c0_66, %c0_67] : memref<1x1xf32, #tpu.memory_space<smem>>
    %84 = vector.broadcast %83 : f32 to vector<1x128xf32>
    %85 = arith.addf %82, %84 : vector<1x128xf32>
    %86 = arith.negf %85 : vector<1x128xf32>
    %87 = math.exp %86 : vector<1x128xf32>
    %cst_68 = arith.constant 1.000000e+00 : f32
    %88 = vector.broadcast %cst_68 : f32 to vector<1x128xf32>
    %89 = arith.addf %88, %87 : vector<1x128xf32>
    %90 = arith.divf %88, %89 : vector<1x128xf32>
    %c0_69 = arith.constant 0 : index
    %c0_70 = arith.constant 0 : index
    %91 = vector.load %arg8[%c0_69, %c0_70] : memref<1x128xf32, #tpu.memory_space<vmem>>, vector<1x128xf32>
    tpu.vector_store %arg8[%c0_69, %c0_70], %90 {strides = array<i32>} : memref<1x128xf32, #tpu.memory_space<vmem>>, vector<1x128xf32>,
    return
  }
  func.func @transform_0(%arg0: i32) -> (i32, i32) {
    %c0_i32 = arith.constant 0 : i32
    %c0_i32_0 = arith.constant 0 : i32
    return %c0_i32, %arg0 : i32, i32
  }
  func.func @transform_1(%arg0: i32) -> (i32, i32) {
    %c0_i32 = arith.constant 0 : i32
    %c0_i32_0 = arith.constant 0 : i32
    %c0_i32_1 = arith.constant 0 : i32
    return %c0_i32, %c0_i32_0 : i32, i32
  }
  func.func @transform_2(%arg0: i32) -> (i32, i32) {
    %c0_i32 = arith.constant 0 : i32
    %c0_i32_0 = arith.constant 0 : i32
    %c0_i32_1 = arith.constant 0 : i32
    return %c0_i32, %c0_i32_0 : i32, i32
  }
  func.func @transform_3(%arg0: i32) -> (i32, i32, i32) {
    %c0_i32 = arith.constant 0 : i32
    %c0_i32_0 = arith.constant 0 : i32
    %c0_i32_1 = arith.constant 0 : i32
    %c0_i32_2 = arith.constant 0 : i32
    return %c0_i32, %c0_i32_0, %c0_i32_1 : i32, i32, i32
  }
  func.func @transform_4(%arg0: i32) -> (i32, i32, i32) {
    %c0_i32 = arith.constant 0 : i32
    %c0_i32_0 = arith.constant 0 : i32
    %c0_i32_1 = arith.constant 0 : i32
    %c0_i32_2 = arith.constant 0 : i32
    return %c0_i32, %c0_i32_0, %c0_i32_1 : i32, i32, i32
  }
  func.func @transform_5(%arg0: i32) -> (i32, i32) {
    %c0_i32 = arith.constant 0 : i32
    %c0_i32_0 = arith.constant 0 : i32
    %c0_i32_1 = arith.constant 0 : i32
    return %c0_i32, %c0_i32_0 : i32, i32
  }
  func.func @transform_6(%arg0: i32) -> (i32, i32) {
    %c0_i32 = arith.constant 0 : i32
    %c0_i32_0 = arith.constant 0 : i32
    %c0_i32_1 = arith.constant 0 : i32
    return %c0_i32, %c0_i32_0 : i32, i32
  }
  func.func @transform_7(%arg0: i32) -> (i32, i32) {
    %c0_i32 = arith.constant 0 : i32
    %c0_i32_0 = arith.constant 0 : i32
    return %c0_i32, %arg0 : i32, i32
  }
}

</mosaic_0001>

<bundles_post_ra>
// kernel: _forward_impl.1
= control target key start
LH: loop header
LB: loop body
LE: loop exit
PB: predicated region body
PF: predicated region fallthrough
CT: control target
= control target key end

     0   :  { %v859_v0 = vmov 0   ;;  %vm57_vm0 = vcmask 130048   ;;  %vm131_vm1 = vcmask 261120   ;;  %s1168_s2 = inlined_call_operand.vmem [shape: f32[32,1], index: 2, kind: input, shape index: {}]   ;;  %s1169_s0 = inlined_call_operand.vmem [shape: f32[16,128], index: 0, kind: input, shape index: {}]   ;;  %s1170_s1 = inlined_call_operand.vmem [shape: f32[32,16], index: 1, kind: input, shape index: {}]   ;;  %s1171_s4 = inlined_call_operand.vmem [shape: f32[8,32,1], index: 4, kind: input, shape index: {}]   ;;  %s1172_s3 = inlined_call_operand.vmem [shape: f32[8,32,32], index: 3, kind: input, shape index: {}]   ;;  %s1173_s5 = inlined_call_operand.vmem [shape: f32[8,32], index: 5, kind: input, shape index: {}]   ;;  %s1174_s6 = inlined_call_operand.<no memory space> [shape: f32[1,1], index: 6, kind: input, shape index: {}]   ;;  %s1175_s7 = inlined_call_operand.vmem [shape: f32[1,128], index: 7, kind: output, shape index: {}]  }
   0x1   :  { %853 = vset.pattern.permute.xlu1 %v859_v0  ;;  %852 = vset.pattern.permute.xlu0 %v859_v0  ;;  %v36_v1 = vld [vmem:[%s1168_s2 + $0x18] sm:$0xff]  ;;  %v34_v2 = vld [vmem:[%s1168_s2 + $0x8] sm:$0xff]  ;;  %v31_v4 = vld [vmem:[%s1169_s0] sm:$0xff] }
   0x2   :  { %v32_v3 = vld [vmem:[%s1169_s0 + $0x8] sm:$0xff]  ;;  %54 = vperm.xlu0 %852, %v36_v1   ;;  %44 = vperm.xlu1 %853, %v34_v2   ;;  %v30_v6 = vld [vmem:[%s1170_s1 + $0x18] sm:$0xff]  ;;  %v27_v7 = vld [vmem:[%s1170_s1] sm:$0xff] }
   0x3   :  { %847 = vmatpush.msra.mxu2 %v32_v3  ;;  %848 = vmatpush.msra.mxu3 %v32_v3  ;;  %v28_v5 = vld [vmem:[%s1170_s1 + $0x8] sm:$0xff]  ;;  %v35_v8 = vld [vmem:[%s1168_s2 + $0x10] sm:$0xff]  ;;  %v33_v9 = vld [vmem:[%s1168_s2] sm:$0xff] }
   0x4   :  { %84 = vmatpush.msra.mxu0 %v32_v3  ;;  %854 = vset.pattern.permute.xlu2 %v859_v0  ;;  %v29_v10 = vld [vmem:[%s1170_s1 + $0x10] sm:$0xff]  ;;  %v108_v11 = vld [vmem:[%s1171_s4 + $0x8] sm:$0xff]  ;;  %v107_v12 = vld [vmem:[%s1171_s4] sm:$0xff] }
   0x5   :  { %849 = vmatpush.msra.mxu2 %v31_v4  ;;  %850 = vmatpush.msra.mxu3 %v31_v4  ;;  %v767_v13 = vld [vmem:[%s1171_s4 + $0x30] sm:$0xff]  ;;  %v766_v14 = vld [vmem:[%s1171_s4 + $0x28] sm:$0xff]  ;;  %v780_v15 = vld [vmem:[%s1171_s4 + $0x58] sm:$0xff] }
   0x6   :  { %754 = vmatmul.msk.f32.vlgmr.msra.gmra.mxu2 %vm57_vm0, %v28_v5  ;;  %756 = vmatmul.msk.f32.vlgmr.msra.gmra.mxu3 %vm57_vm0, %v30_v6  ;;  %v779_v16 = vld [vmem:[%s1171_s4 + $0x50] sm:$0xff]  ;;  %v777_v17 = vld [vmem:[%s1171_s4 + $0x40] sm:$0xff]  ;;  %v792_v18 = vld [vmem:[%s1171_s4 + $0x78] sm:$0xff] }
   0x7   :  { %85 = vmatpush.msra.mxu0 %v31_v4  ;;  %v790_v19 = vld [vmem:[%s1171_s4 + $0x68] sm:$0xff]  ;;  %v789_v20 = vld [vmem:[%s1171_s4 + $0x60] sm:$0xff]  ;;  %v803_v21 = vld [vmem:[%s1171_s4 + $0x90] sm:$0xff] }
   0x8   :  { %753 = vmatmul.msk.f32.vlgmr.msra.gmra.mxu0 %vm57_vm0, %v27_v7  ;;  %v802_v22 = vld [vmem:[%s1171_s4 + $0x88] sm:$0xff]  ;;  %v816_v23 = vld [vmem:[%s1171_s4 + $0xb8] sm:$0xff]  ;;  %v815_v24 = vld [vmem:[%s1171_s4 + $0xb0] sm:$0xff] }
   0x9   :  { %v813_v25 = vld [vmem:[%s1171_s4 + $0xa0] sm:$0xff]  ;;  %v828_v26 = vld [vmem:[%s1171_s4 + $0xd8] sm:$0xff]  ;;  %v826_v27 = vld [vmem:[%s1171_s4 + $0xc8] sm:$0xff] }
   0xa   :  { %49 = vperm.xlu0 %852, %v35_v8   ;;  %39 = vperm.xlu1 %853, %v33_v9   ;;  %v825_v28 = vld [vmem:[%s1171_s4 + $0xc0] sm:$0xff]  ;;  %v110_v29 = vld [vmem:[%s1171_s4 + $0x18] sm:$0xff]  ;;  %v839_v30 = vld [vmem:[%s1171_s4 + $0xf0] sm:$0xff] }
   0xb   :  { %128 = vperm.xlu2 %854, %v110_v29   ;;  %v838_v31 = vld [vmem:[%s1171_s4 + $0xe8] sm:$0xff]  ;;  %v109_v32 = vld [vmem:[%s1171_s4 + $0x10] sm:$0xff]  ;;  %v768_v33 = vld [vmem:[%s1171_s4 + $0x38] sm:$0xff] }
   0xc   :  { %v765_v34 = vld [vmem:[%s1171_s4 + $0x20] sm:$0xff]  ;;  %v778_v35 = vld [vmem:[%s1171_s4 + $0x48] sm:$0xff]  ;;  %v791_v36 = vld [vmem:[%s1171_s4 + $0x70] sm:$0xff] }
   0xd   :  { %v804_v37 = vld [vmem:[%s1171_s4 + $0x98] sm:$0xff]  ;;  %v801_v44 = vld [vmem:[%s1171_s4 + $0x80] sm:$0xff]  ;;  %v814_v53 = vld [vmem:[%s1171_s4 + $0xa8] sm:$0xff] }
   0xe   :  { %755 = vmatmul.msk.f32.gmra.mxu2 %vm57_vm0, %v29_v10  ;;  %v103_v56 = vld [vmem:[%s1172_s3] sm:$0xff]  ;;  %v827_v57 = vld [vmem:[%s1171_s4 + $0xd0] sm:$0xff]  ;;  %v104_v58 = vld [vmem:[%s1172_s3 + $0x8] sm:$0xff] }
   0xf   :  { %v840_v59 = vld [vmem:[%s1171_s4 + $0xf8] sm:$0xff]  ;;  %v105_v60 = vld [vmem:[%s1172_s3 + $0x10] sm:$0xff]  ;;  %v837_v61 = vld [vmem:[%s1171_s4 + $0xe0] sm:$0xff] }
  0x10   :  { %v106_v62 = vld [vmem:[%s1172_s3 + $0x18] sm:$0xff] }
  0x12   :  { %118 = vperm.xlu0 %852, %v108_v11   ;;  %113 = vperm.xlu1 %853, %v107_v12  }
  0x13   :  { %123 = vperm.xlu2 %854, %v109_v32  }
  0x1a   :  { %199 = vperm.xlu0 %852, %v767_v13   ;;  %194 = vperm.xlu1 %853, %v766_v14  }
  0x1b   :  { %204 = vperm.xlu2 %854, %v768_v33  }
  0x22   :  { %279 = vperm.xlu0 %852, %v780_v15   ;;  %274 = vperm.xlu1 %853, %v779_v16   ;;  %v761_v15 = vld [vmem:[%s1172_s3 + $0x20] sm:$0xff]  ;;  %v762_v16 = vld [vmem:[%s1172_s3 + $0x28] sm:$0xff] }
  0x23   :  { %189 = vperm.xlu2 %854, %v765_v34  }
  0x2a   :  { %264 = vperm.xlu0 %852, %v777_v17   ;;  %354 = vperm.xlu1 %853, %v792_v18   ;;  %v763_v17 = vld [vmem:[%s1172_s3 + $0x30] sm:$0xff]  ;;  %v764_v18 = vld [vmem:[%s1172_s3 + $0x38] sm:$0xff] }
  0x2b   :  { %269 = vperm.xlu2 %854, %v778_v35   ;;  %v773_v35 = vld [vmem:[%s1172_s3 + $0x40] sm:$0xff] }
  0x32   :  { %344 = vperm.xlu0 %852, %v790_v19   ;;  %339 = vperm.xlu1 %853, %v789_v20  }
  0x33   :  { %349 = vperm.xlu2 %854, %v791_v36   ;;  %v774_v36 = vld [vmem:[%s1172_s3 + $0x48] sm:$0xff] }
  0x3a   :  { %424 = vperm.xlu0 %852, %v803_v21   ;;  %419 = vperm.xlu1 %853, %v802_v22  }
  0x3b   :  { %429 = vperm.xlu2 %854, %v804_v37   ;;  %v775_v37 = vld [vmem:[%s1172_s3 + $0x50] sm:$0xff] }
  0x42   :  { %504 = vperm.xlu0 %852, %v816_v23   ;;  %499 = vperm.xlu1 %853, %v815_v24  }
  0x43   :  { %414 = vperm.xlu2 %854, %v801_v44  }
  0x4a   :  { %489 = vperm.xlu0 %852, %v813_v25   ;;  %579 = vperm.xlu1 %853, %v828_v26  }
  0x4b   :  { %494 = vperm.xlu2 %854, %v814_v53  }
  0x52   :  { %569 = vperm.xlu0 %852, %v826_v27   ;;  %564 = vperm.xlu1 %853, %v825_v28  }
  0x53   :  { %574 = vperm.xlu2 %854, %v827_v57   ;;  %v787_v57 = vld [vmem:[%s1172_s3 + $0x70] sm:$0xff] }
  0x5a   :  { %649 = vperm.xlu0 %852, %v839_v30   ;;  %644 = vperm.xlu1 %853, %v838_v31  }
  0x5b   :  { %654 = vperm.xlu2 %854, %v840_v59  }
  0x63   :  { %639 = vperm.xlu2 %854, %v837_v61  }
  0x65   :  { %v129_v1 = vpop.permute.xlu2 %128 }
  0x6d   :  { %v124_v3 = vpop.permute.xlu2 %123 }
  0x74   :  { %v55_v38 = vpop.permute.xlu0 %54  ;;  %v45_v39 = vpop.permute.xlu1 %44 }
  0x75   :  { %v205_v22 = vpop.permute.xlu2 %204 }
  0x7c   :  { %v50_v45 = vpop.permute.xlu0 %49  ;;  %v40_v50 = vpop.permute.xlu1 %39 }
  0x7d   :  { %v190_v30 = vpop.permute.xlu2 %189 }
  0x84   :  { %v119_v7 = vpop.permute.xlu0 %118  ;;  %v114_v10 = vpop.permute.xlu1 %113 }
  0x85   :  { %v87_v46 = vpop.f32.mrf.mxu0 }
  0x86   :  { %v88_v51 = vadd.f32 %v87_v46, %v40_v50 }
  0x88   :  { %v99_v55 = vmax.f32 %v88_v51, 0.0 }
  0x89   :  { %v90_v40 = vpop.f32.mrf.mxu2  ;;  %v96_v41 = vpop.f32.mrf.mxu3 }
  0x8a   :  { %v97_v42 = vadd.f32 %v96_v41, %v55_v38  ;;  %v91_v48 = vadd.f32 %v90_v40, %v45_v39  ;;  %v776_v38 = vld [vmem:[%s1172_s3 + $0x58] sm:$0xff] }
  0x8c   :  { %v102_v43 = vmax.f32 %v97_v42, 0.0  ;;  %v100_v54 = vmax.f32 %v91_v48, 0.0  ;;  %v200_v23 = vpop.permute.xlu0 %199  ;;  %v195_v27 = vpop.permute.xlu1 %194 }
  0x8e   :  { %156 = vmatpush.msra.mxu1 %v102_v43 }
  0x91   :  { %v93_v47 = vpop.f32.mrf.mxu2 }
  0x92   :  { %v94_v49 = vadd.f32 %v93_v47, %v50_v45  ;;  %v270_v47 = vpop.permute.xlu2 %269 }
  0x94   :  { %v101_v52 = vmax.f32 %v94_v49, 0.0  ;;  %v280_v42 = vpop.permute.xlu0 %279  ;;  %v275_v43 = vpop.permute.xlu1 %274 }
  0x96   :  { %157 = vmatpush.msra.mxu1 %v101_v52 }
  0x98   :  { %158 = vmatpush.msra.mxu1 %v100_v54 }
  0x9a   :  { %159 = vmatpush.msra.mxu1 %v99_v55  ;;  %v785_v55 = vld [vmem:[%s1172_s3 + $0x60] sm:$0xff] }
  0x9b   :  { %757 = vmatmul.msk.f32.vlgmr.msra.gmra.mxu1 %vm131_vm1, %v103_v56  ;;  %v786_v56 = vld [vmem:[%s1172_s3 + $0x68] sm:$0xff] }
  0x9c   :  { %v265_v50 = vpop.permute.xlu0 %264 }
  0xa3   :  { %758 = vmatmul.msk.f32.gmra.mxu1 %vm131_vm1, %v104_v58  ;;  %v788_v58 = vld [vmem:[%s1172_s3 + $0x78] sm:$0xff] }
  0xab   :  { %759 = vmatmul.msk.f32.gmra.mxu1 %vm131_vm1, %v105_v60 }
  0xb3   :  { %760 = vmatmul.msk.f32.gmra.mxu1 %vm131_vm1, %v106_v62  ;;  %v355_v62 = vpop.permute.xlu1 %354 }
 0x118   :  { %v161_v63 = vpop.f32.mrf.mxu1 }
 0x119   :  { %v162_v11 = vadd.f32 %v161_v63, %v114_v10  ;;  %v350_v63 = vpop.permute.xlu2 %349 }
 0x11b   :  { %v173_v14 = vmax.f32 %v162_v11, 0.0  ;;  %v797_v11 = vld [vmem:[%s1172_s3 + $0x80] sm:$0xff] }
 0x120   :  { %v164_v0 = vpop.f32.mrf.mxu1 }
 0x121   :  { %v165_v8 = vadd.f32 %v164_v0, %v119_v7 }
 0x123   :  { %v174_v13 = vmax.f32 %v165_v8, 0.0 }
 0x128   :  { %v167_v2 = vpop.f32.mrf.mxu1 }
 0x129   :  { %v168_v5 = vadd.f32 %v167_v2, %v124_v3  ;;  %v345_v3 = vpop.permute.xlu0 %344 }
 0x12b   :  { %v175_v12 = vmax.f32 %v168_v5, 0.0 }
 0x130   :  { %v170_v4 = vpop.f32.mrf.mxu1 }
 0x131   :  { %v171_v6 = vadd.f32 %v170_v4, %v129_v1 }
 0x133   :  { %v176_v9 = vmax.f32 %v171_v6, 0.0  ;;  %v340_v6 = vpop.permute.xlu1 %339 }
 0x135   :  { %231 = vmatpush.msrb.mxu2 %v176_v9 }
 0x137   :  { %232 = vmatpush.msrb.mxu2 %v175_v12  ;;  %v798_v12 = vld [vmem:[%s1172_s3 + $0x88] sm:$0xff] }
 0x139   :  { %233 = vmatpush.msrb.mxu2 %v174_v13  ;;  %v799_v13 = vld [vmem:[%s1172_s3 + $0x90] sm:$0xff] }
 0x13b   :  { %234 = vmatpush.msrb.mxu2 %v173_v14  ;;  %v800_v14 = vld [vmem:[%s1172_s3 + $0x98] sm:$0xff] }
 0x13c   :  { %769 = vmatmul.msk.f32.vlgmr.msrb.gmra.mxu2 %vm131_vm1, %v761_v15 }
 0x144   :  { %770 = vmatmul.msk.f32.gmra.mxu2 %vm131_vm1, %v762_v16 }
 0x14c   :  { %771 = vmatmul.msk.f32.gmra.mxu2 %vm131_vm1, %v763_v17 }
 0x154   :  { %772 = vmatmul.msk.f32.gmra.mxu2 %vm131_vm1, %v764_v18  ;;  %v430_v18 = vpop.permute.xlu2 %429 }
 0x1bf   :  { %v236_v19 = vpop.f32.mrf.mxu2 }
 0x1c0   :  { %v237_v31 = vadd.f32 %v236_v19, %v190_v30  ;;  %v425_v19 = vpop.permute.xlu0 %424 }
 0x1c2   :  { %v248_v34 = vmax.f32 %v237_v31, 0.0  ;;  %v809_v31 = vld [vmem:[%s1172_s3 + $0xa0] sm:$0xff] }
 0x1c7   :  { %v239_v20 = vpop.f32.mrf.mxu2 }
 0x1c8   :  { %v240_v28 = vadd.f32 %v239_v20, %v195_v27 }
 0x1ca   :  { %v249_v33 = vmax.f32 %v240_v28, 0.0 }
 0x1cf   :  { %v242_v21 = vpop.f32.mrf.mxu2 }
 0x1d0   :  { %v243_v25 = vadd.f32 %v242_v21, %v200_v23  ;;  %v420_v23 = vpop.permute.xlu1 %419 }
 0x1d2   :  { %v250_v32 = vmax.f32 %v243_v25, 0.0 }
 0x1d7   :  { %v245_v24 = vpop.f32.mrf.mxu2 }
 0x1d8   :  { %v246_v26 = vadd.f32 %v245_v24, %v205_v22 }
 0x1da   :  { %v251_v29 = vmax.f32 %v246_v26, 0.0  ;;  %v415_v26 = vpop.permute.xlu2 %414 }
 0x1dc   :  { %306 = vmatpush.msrb.mxu3 %v251_v29 }
 0x1de   :  { %307 = vmatpush.msrb.mxu3 %v250_v32  ;;  %v810_v32 = vld [vmem:[%s1172_s3 + $0xa8] sm:$0xff] }
 0x1e0   :  { %308 = vmatpush.msrb.mxu3 %v249_v33  ;;  %v811_v33 = vld [vmem:[%s1172_s3 + $0xb0] sm:$0xff] }
 0x1e2   :  { %309 = vmatpush.msrb.mxu3 %v248_v34  ;;  %v812_v34 = vld [vmem:[%s1172_s3 + $0xb8] sm:$0xff] }
 0x1e3   :  { %781 = vmatmul.msk.f32.vlgmr.msrb.gmra.mxu3 %vm131_vm1, %v773_v35 }
 0x1eb   :  { %782 = vmatmul.msk.f32.gmra.mxu3 %vm131_vm1, %v774_v36 }
 0x1f3   :  { %783 = vmatmul.msk.f32.gmra.mxu3 %vm131_vm1, %v775_v37 }
 0x1fb   :  { %784 = vmatmul.msk.f32.gmra.mxu3 %vm131_vm1, %v776_v38  ;;  %v505_v38 = vpop.permute.xlu0 %504 }
 0x266   :  { %v311_v39 = vpop.f32.mrf.mxu3 }
 0x267   :  { %v312_v51 = vadd.f32 %v311_v39, %v265_v50  ;;  %v500_v39 = vpop.permute.xlu1 %499 }
 0x269   :  { %v323_v54 = vmax.f32 %v312_v51, 0.0  ;;  %v821_v51 = vld [vmem:[%s1172_s3 + $0xc0] sm:$0xff] }
 0x26e   :  { %v314_v40 = vpop.f32.mrf.mxu3 }
 0x26f   :  { %v315_v48 = vadd.f32 %v314_v40, %v270_v47 }
 0x271   :  { %v324_v53 = vmax.f32 %v315_v48, 0.0 }
 0x276   :  { %v317_v41 = vpop.f32.mrf.mxu3 }
 0x277   :  { %v318_v45 = vadd.f32 %v317_v41, %v275_v43  ;;  %v495_v43 = vpop.permute.xlu2 %494 }
 0x279   :  { %v325_v52 = vmax.f32 %v318_v45, 0.0 }
 0x27e   :  { %v320_v44 = vpop.f32.mrf.mxu3 }
 0x27f   :  { %v321_v46 = vadd.f32 %v320_v44, %v280_v42 }
 0x281   :  { %v326_v49 = vmax.f32 %v321_v46, 0.0  ;;  %v490_v46 = vpop.permute.xlu0 %489 }
 0x283   :  { %381 = vmatpush.msrb.mxu0 %v326_v49 }
 0x285   :  { %382 = vmatpush.msrb.mxu0 %v325_v52  ;;  %v822_v52 = vld [vmem:[%s1172_s3 + $0xc8] sm:$0xff] }
 0x287   :  { %383 = vmatpush.msrb.mxu0 %v324_v53  ;;  %v823_v53 = vld [vmem:[%s1172_s3 + $0xd0] sm:$0xff] }
 0x289   :  { %384 = vmatpush.msrb.mxu0 %v323_v54  ;;  %v824_v54 = vld [vmem:[%s1172_s3 + $0xd8] sm:$0xff] }
 0x28a   :  { %793 = vmatmul.msk.f32.vlgmr.msrb.gmra.mxu0 %vm131_vm1, %v785_v55 }
 0x292   :  { %794 = vmatmul.msk.f32.gmra.mxu0 %vm131_vm1, %v786_v56 }
 0x29a   :  { %795 = vmatmul.msk.f32.gmra.mxu0 %vm131_vm1, %v787_v57 }
 0x2a2   :  { %796 = vmatmul.msk.f32.gmra.mxu0 %vm131_vm1, %v788_v58  ;;  %v580_v58 = vpop.permute.xlu1 %579 }
 0x307   :  { %v386_v59 = vpop.f32.mrf.mxu0 }
 0x308   :  { %v387_v7 = vadd.f32 %v386_v59, %v340_v6  ;;  %v575_v59 = vpop.permute.xlu2 %574 }
 0x30a   :  { %v398_v10 = vmax.f32 %v387_v7, 0.0  ;;  %v833_v7 = vld [vmem:[%s1172_s3 + $0xe0] sm:$0xff] }
 0x30f   :  { %v389_v60 = vpop.f32.mrf.mxu0 }
 0x310   :  { %v390_v4 = vadd.f32 %v389_v60, %v345_v3 }
 0x312   :  { %v399_v9 = vmax.f32 %v390_v4, 0.0 }
 0x317   :  { %v392_v61 = vpop.f32.mrf.mxu0 }
 0x318   :  { %v393_v1 = vadd.f32 %v392_v61, %v350_v63  ;;  %v570_v63 = vpop.permute.xlu0 %569 }
 0x31a   :  { %v400_v8 = vmax.f32 %v393_v1, 0.0 }
 0x31f   :  { %v395_v0 = vpop.f32.mrf.mxu0 }
 0x320   :  { %v396_v2 = vadd.f32 %v395_v0, %v355_v62 }
 0x322   :  { %v401_v5 = vmax.f32 %v396_v2, 0.0  ;;  %v565_v2 = vpop.permute.xlu1 %564 }
 0x324   :  { %456 = vmatpush.msrb.mxu1 %v401_v5 }
 0x326   :  { %457 = vmatpush.msrb.mxu1 %v400_v8  ;;  %v834_v8 = vld [vmem:[%s1172_s3 + $0xe8] sm:$0xff] }
 0x328   :  { %458 = vmatpush.msrb.mxu1 %v399_v9  ;;  %v835_v9 = vld [vmem:[%s1172_s3 + $0xf0] sm:$0xff] }
 0x32a   :  { %459 = vmatpush.msrb.mxu1 %v398_v10  ;;  %v836_v10 = vld [vmem:[%s1172_s3 + $0xf8] sm:$0xff] }
 0x32b   :  { %805 = vmatmul.msk.f32.vlgmr.msrb.gmra.mxu1 %vm131_vm1, %v797_v11 }
 0x333   :  { %806 = vmatmul.msk.f32.gmra.mxu1 %vm131_vm1, %v798_v12 }
 0x33b   :  { %807 = vmatmul.msk.f32.gmra.mxu1 %vm131_vm1, %v799_v13 }
 0x343   :  { %808 = vmatmul.msk.f32.gmra.mxu1 %vm131_vm1, %v800_v14  ;;  %v655_v14 = vpop.permute.xlu2 %654 }
 0x3a8   :  { %v461_v15 = vpop.f32.mrf.mxu1 }
 0x3a9   :  { %v462_v27 = vadd.f32 %v461_v15, %v415_v26  ;;  %v650_v15 = vpop.permute.xlu0 %649 }
 0x3ab   :  { %v473_v30 = vmax.f32 %v462_v27, 0.0  ;;  %v702_v27 = vld [vmem:[%s1173_s5] sm:$0xff] }
 0x3b0   :  { %v464_v16 = vpop.f32.mrf.mxu1 }
 0x3b1   :  { %v465_v24 = vadd.f32 %v464_v16, %v420_v23 }
 0x3b3   :  { %v474_v29 = vmax.f32 %v465_v24, 0.0 }
 0x3b8   :  { %v467_v17 = vpop.f32.mrf.mxu1 }
 0x3b9   :  { %v468_v21 = vadd.f32 %v467_v17, %v425_v19  ;;  %v645_v19 = vpop.permute.xlu1 %644 }
 0x3bb   :  { %v475_v28 = vmax.f32 %v468_v21, 0.0 }
 0x3c0   :  { %v470_v20 = vpop.f32.mrf.mxu1 }
 0x3c1   :  { %v471_v22 = vadd.f32 %v470_v20, %v430_v18 }
 0x3c3   :  { %v476_v25 = vmax.f32 %v471_v22, 0.0  ;;  %v640_v22 = vpop.permute.xlu2 %639 }
 0x3c5   :  { %531 = vmatpush.msra.mxu2 %v476_v25 }
 0x3c7   :  { %532 = vmatpush.msra.mxu2 %v475_v28  ;;  %v727_v28 = vstv %s1174_s6 }
 0x3c9   :  { %533 = vmatpush.msra.mxu2 %v474_v29 }
 0x3cb   :  { %534 = vmatpush.msra.mxu2 %v473_v30 }
 0x3cc   :  { %817 = vmatmul.msk.f32.vlgmr.msra.gmra.mxu2 %vm131_vm1, %v809_v31 }
 0x3d4   :  { %818 = vmatmul.msk.f32.gmra.mxu2 %vm131_vm1, %v810_v32 }
 0x3dc   :  { %819 = vmatmul.msk.f32.gmra.mxu2 %vm131_vm1, %v811_v33 }
 0x3e4   :  { %820 = vmatmul.msk.f32.gmra.mxu2 %vm131_vm1, %v812_v34 }
 0x44f   :  { %v536_v35 = vpop.f32.mrf.mxu2 }
 0x450   :  { %v537_v47 = vadd.f32 %v536_v35, %v490_v46 }
 0x452   :  { %v548_v50 = vmax.f32 %v537_v47, 0.0 }
 0x457   :  { %v539_v36 = vpop.f32.mrf.mxu2 }
 0x458   :  { %v540_v44 = vadd.f32 %v539_v36, %v495_v43 }
 0x45a   :  { %v549_v49 = vmax.f32 %v540_v44, 0.0 }
 0x45f   :  { %v542_v37 = vpop.f32.mrf.mxu2 }
 0x460   :  { %v543_v41 = vadd.f32 %v542_v37, %v500_v39 }
 0x462   :  { %v550_v48 = vmax.f32 %v543_v41, 0.0 }
 0x467   :  { %v545_v40 = vpop.f32.mrf.mxu2 }
 0x468   :  { %v546_v42 = vadd.f32 %v545_v40, %v505_v38 }
 0x46a   :  { %v551_v45 = vmax.f32 %v546_v42, 0.0 }
 0x46c   :  { %606 = vmatpush.msra.mxu3 %v551_v45 }
 0x46e   :  { %607 = vmatpush.msra.mxu3 %v550_v48 }
 0x470   :  { %608 = vmatpush.msra.mxu3 %v549_v49 }
 0x472   :  { %609 = vmatpush.msra.mxu3 %v548_v50 }
 0x473   :  { %829 = vmatmul.msk.f32.vlgmr.msra.gmra.mxu3 %vm131_vm1, %v821_v51 }
 0x47b   :  { %830 = vmatmul.msk.f32.gmra.mxu3 %vm131_vm1, %v822_v52 }
 0x483   :  { %831 = vmatmul.msk.f32.gmra.mxu3 %vm131_vm1, %v823_v53 }
 0x48b   :  { %832 = vmatmul.msk.f32.gmra.mxu3 %vm131_vm1, %v824_v54 }
 0x4f6   :  { %v611_v55 = vpop.f32.mrf.mxu3 }
 0x4f7   :  { %v612_v3 = vadd.f32 %v611_v55, %v565_v2 }
 0x4f9   :  { %v623_v6 = vmax.f32 %v612_v3, 0.0 }
 0x4fe   :  { %v614_v56 = vpop.f32.mrf.mxu3 }
 0x4ff   :  { %v615_v0 = vadd.f32 %v614_v56, %v570_v63 }
 0x501   :  { %v624_v5 = vmax.f32 %v615_v0, 0.0 }
 0x506   :  { %v617_v57 = vpop.f32.mrf.mxu3 }
 0x507   :  { %v618_v61 = vadd.f32 %v617_v57, %v575_v59 }
 0x509   :  { %v625_v4 = vmax.f32 %v618_v61, 0.0 }
 0x50e   :  { %v620_v60 = vpop.f32.mrf.mxu3 }
 0x50f   :  { %v621_v62 = vadd.f32 %v620_v60, %v580_v58 }
 0x511   :  { %v626_v1 = vmax.f32 %v621_v62, 0.0 }
 0x513   :  { %681 = vmatpush.msra.mxu0 %v626_v1 }
 0x515   :  { %682 = vmatpush.msra.mxu0 %v625_v4 }
 0x517   :  { %683 = vmatpush.msra.mxu0 %v624_v5 }
 0x519   :  { %684 = vmatpush.msra.mxu0 %v623_v6 }
 0x51a   :  { %841 = vmatmul.msk.f32.vlgmr.msra.gmra.mxu0 %vm131_vm1, %v833_v7 }
 0x522   :  { %842 = vmatmul.msk.f32.gmra.mxu0 %vm131_vm1, %v834_v8 }
 0x52a   :  { %843 = vmatmul.msk.f32.gmra.mxu0 %vm131_vm1, %v835_v9 }
 0x532   :  { %844 = vmatmul.msk.f32.gmra.mxu0 %vm131_vm1, %v836_v10 }
 0x597   :  { %v686_v11 = vpop.f32.mrf.mxu0 }
 0x598   :  { %v687_v23 = vadd.f32 %v686_v11, %v640_v22 }
 0x59a   :  { %v698_v26 = vmax.f32 %v687_v23, 0.0 }
 0x59f   :  { %v689_v12 = vpop.f32.mrf.mxu0 }
 0x5a0   :  { %v690_v20 = vadd.f32 %v689_v12, %v645_v19 }
 0x5a2   :  { %v699_v25 = vmax.f32 %v690_v20, 0.0 }
 0x5a7   :  { %v692_v13 = vpop.f32.mrf.mxu0 }
 0x5a8   :  { %v693_v17 = vadd.f32 %v692_v13, %v650_v15 }
 0x5aa   :  { %v700_v24 = vmax.f32 %v693_v17, 0.0 }
 0x5af   :  { %v695_v16 = vpop.f32.mrf.mxu0 }
 0x5b0   :  { %v696_v18 = vadd.f32 %v695_v16, %v655_v14 }
 0x5b2   :  { %v701_v21 = vmax.f32 %v696_v18, 0.0 }
 0x5b4   :  { %718 = vmatpush.msra.mxu1 %v701_v21 }
 0x5b6   :  { %719 = vmatpush.msra.mxu1 %v700_v24 }
 0x5b8   :  { %720 = vmatpush.msra.mxu1 %v699_v25 }
 0x5ba   :  { %721 = vmatpush.msra.mxu1 %v698_v26 }
 0x5bb   :  { %845 = vmatmul.msk.f32.vlgmr.msra.gmra.mxu1 %vm131_vm1, %v702_v27 }
 0x638   :  { %v723_v29 = vpop.f32.mrf.mxu1 }
 0x639   :  { %v728_v30 = vadd.f32 %v727_v28, %v723_v29 }
 0x63b   :  { %v846_v31 = vmul.f32 -1.442695, %v728_v30 }
 0x63d   :  { %855 = vpow2.f32 %v846_v31 }
 0x643   :  { %v856_v32 = vpop.eup %855 }
 0x644   :  { %v732_v33 = vadd.f32 1.0, %v856_v32 }
 0x646   :  { %857 = vrcp.f32 %v732_v33  ;;  %v744_v37 = vand.u32 2147483648, %v732_v33  ;;  %v742_v39 = vand.u32 2147483647, %v732_v33  ;;  %vm738_vm3 = vweird.f32 %v732_v33 }
 0x648   :  { %v745_v41 = vor.u32 1.1754944e-38, %v744_v37  ;;  %vm743_vm5 = vcmp.eq.f32.partialorder %v742_v39, 8.507059e+37 }
 0x64c   :  { %v858_v34 = vpop.eup %857 }
 0x64d   :  { %v734_v35 = vmul.f32 %v858_v34, %v732_v33  ;;  %vm739_vm2 = vweird.f32 %v858_v34 }
 0x64e   :  { %vm740_vm4 = vmor %vm738_vm3, %vm739_vm2 }
 0x64f   :  { %v735_v36 = vsub.f32 1.0, %v734_v35 }
 0x651   :  { %v736_v38 = vmul.f32 %v858_v34, %v735_v36 }
 0x653   :  { %v737_v40 = vadd.f32 %v858_v34, %v736_v38 }
 0x655   :  { %v741_v42 = vsel %vm740_vm4, %v858_v34, %v737_v40 }
 0x656   :  { %v746_v43 = vsel %vm743_vm5, %v745_v41, %v741_v42 }
 0x657   :  { %748 = vst [vmem:[%s1175_s7] sm:$0x1] %v746_v43 }

</bundles_post_ra>
